<compile_context>
chip_gen: v5e
topology: v5e:2x2
jax: 0.10.0
libtpu: 0.0.40
codegen_flags: <defaults>
</compile_context>

<pallas_src>
import jax
import jax.numpy as jnp
from jax import lax
from jax.experimental import pallas as pl
from jax.experimental.pallas import tpu as pltpu


def fc_logsoftmax_kernel(x_ref, wd_ref, o_ref):
    # x_ref: (TB, F), wd_ref: (1, F) holding w[0]-w[1], o_ref: (TB, 2)
    x = x_ref[...]
    wd = wd_ref[...]

    # d = z0 - z1 = x @ (w0 - w1), expressed as a direct contraction over dim 1
    # of both operands (no materialized transpose), f32 MXU accumulation.
    d = lax.dot_general(
        x, wd,
        dimension_numbers=(((1,), (1,)), ((), ())),
        preferred_element_type=jnp.float32,
    )  # (TB, 1)

    # Closed-form 2-class log_softmax (no cross-lane reductions):
    #   out0 = -softplus(-d) = -(max(-d, 0) + log1p(exp(-|d|)))
    #   out1 = out0 - d      ( == -softplus(d) )
    sp = jnp.maximum(-d, 0.0) + jnp.log1p(jnp.exp(-jnp.abs(d)))
    out0 = -sp
    out1 = out0 - d
    o_ref[...] = jnp.concatenate([out0, out1], axis=-1).astype(o_ref.dtype)
    # TODO(synk): for very large B a lane-dense (OUT, B) output slab (transposed
    # in the wrapper) would avoid masked 2/128-lane stores; output is <1% of the
    # bytes moved, so only worth it if a bundle dump shows store-slot pressure.


def _choose_batch_tile(B, max_block_b):
    """Pick a batch tile: full extent for tiny B, otherwise a multiple of 8
    that yields >=2 balanced grid steps (so both v7x TensorCores get work),
    capped at max_block_b."""
    if B <= 8:
        return B  # full-extent block satisfies the (8,128) rule directly
    half = pl.cdiv(B, 2)
    tb = ((half + 7) // 8) * 8
    return min(max_block_b, tb)


def fc_layer_forward(x, w, *, max_block_b=4096):
    """x: (B, 240), w: (2, 240) -> (B, 2) float32 log-probabilities.

    NOTE: at truly tiny B (a handful of rows) the pallas_call fixed overhead
    dominates and a fused jnp expression would match or beat this kernel; it is
    kept as a Pallas call here to exercise the kernel path.
    """
    B, F = x.shape
    OUT = w.shape[0]
    assert OUT == 2, "FCLayer is a 2-class head"

    # Both log_softmax outputs depend only on d = z0 - z1, so contract against
    # the single difference vector instead of the full (2, F) weight.
    w_diff = (w[0:1, :] - w[1:2, :]).astype(x.dtype)  # (1, F)

    tb = _choose_batch_tile(B, max_block_b)
    grid = (pl.cdiv(B, tb),)
    # When B % tb != 0 the last grid step reads padded/garbage rows and Pallas
    # drops the out-of-range output rows. Safe because the kernel is purely
    # per-row (no cross-row reduction inside a tile).

    cost = pl.CostEstimate(
        flops=2 * B * F + 4 * B,          # single-vector contraction + epilogue
        transcendentals=2 * B,            # one exp + one log1p per row
        bytes_accessed=4 * (B * F + F + B * OUT),
    )

    return pl.pallas_call(
        fc_logsoftmax_kernel,
        out_shape=jax.ShapeDtypeStruct((B, OUT), jnp.float32),
        grid_spec=pltpu.PrefetchScalarGridSpec(
            num_scalar_prefetch=0,
            grid=grid,
            in_specs=[
                pl.BlockSpec((tb, F), lambda i: (i, 0)),   # x: tiled over batch
                pl.BlockSpec((1, F), lambda i: (0, 0)),    # w_diff: resident
            ],
            out_specs=pl.BlockSpec((tb, OUT), lambda i: (i, 0)),
        ),
        compiler_params=pltpu.CompilerParams(
            # Batch tiles are independent -> shardable across v7x's 2 TensorCores.
            dimension_semantics=("parallel",),
        ),
        cost_estimate=cost,
    )(x, w_diff)


def reference_forward(x, w):
    logits = x @ w.T
    return jax.nn.log_softmax(logits, axis=1)


if __name__ == "__main__":
    key = jax.random.PRNGKey(0)
    kx, kw, kx2 = jax.random.split(key, 3)

    IN_FEATURES = 16 * 1 * 15  # 240
    OUT_FEATURES = 2

    # Deterministic synthetic parameters: mimic nn.Linear default init
    # (uniform in [-1/sqrt(fan_in), 1/sqrt(fan_in)]).
    bound = 1.0 / (IN_FEATURES ** 0.5)
    w = jax.random.uniform(
        kw, (OUT_FEATURES, IN_FEATURES), dtype=jnp.float32,
        minval=-bound, maxval=bound,
    )

    # Primary small-shape test (matches the module's expected tiny batch).
    B = 2
    x = jax.random.normal(kx, (B, IN_FEATURES), dtype=jnp.float32)
    out = jax.block_until_ready(fc_layer_forward(x, w))
    ref = reference_forward(x, w)
    assert out.shape == (B, OUT_FEATURES)
    assert jnp.allclose(out, ref, atol=1e-5, rtol=1e-5)

    # Secondary test: exercises the multi-step (ragged tail) grid path that the
    # >=2-balanced-steps tiling produces for mid-size B.
    B2 = 100
    x2 = jax.random.normal(kx2, (B2, IN_FEATURES), dtype=jnp.float32)
    out2 = jax.block_until_ready(fc_layer_forward(x2, w))
    ref2 = reference_forward(x2, w)
    assert out2.shape == (B2, OUT_FEATURES)
    assert jnp.allclose(out2, ref2, atol=1e-5, rtol=1e-5)

    print("KERNEL_OK")
</pallas_src>

<mosaic_0001>
module attributes {stable_mosaic.version = 11 : i64} {
  func.func @fc_logsoftmax_kernel(%arg0: i32, %arg1: memref<2x240xf32, #tpu.memory_space<vmem>>, %arg2: memref<1x240xf32, #tpu.memory_space<vmem>>, %arg3: memref<2x2xf32, #tpu.memory_space<vmem>>) attributes {dimension_semantics = [#tpu.dimension_semantics<parallel>], iteration_bounds = array<i64: 1>, scalar_prefetch = 0 : i64, scratch_operands = 0 : i64, tpu.core_type = #tpu.core_type<tc>, window_params = [{transform_indices = @transform_0, window_bounds = array<i64: 2, 240>}, {pipeline_mode = #tpu.pipeline_mode<synchronous>, transform_indices = @transform_1, window_bounds = array<i64: 1, 240>}, {transform_indices = @transform_2, window_bounds = array<i64: 2, 2>}]} {
    %c0 = arith.constant 0 : index
    %c0_0 = arith.constant 0 : index
    %0 = vector.load %arg1[%c0, %c0_0] : memref<2x240xf32, #tpu.memory_space<vmem>>, vector<2x240xf32>
    %c0_1 = arith.constant 0 : index
    %c0_2 = arith.constant 0 : index
    %1 = vector.load %arg2[%c0_1, %c0_2] : memref<1x240xf32, #tpu.memory_space<vmem>>, vector<1x240xf32>
    %cst = arith.constant dense<0.000000e+00> : vector<2x1xf32>
    %2 = tpu.matmul %0, %1, %cst {dimension_numbers = #tpu.dot_dimension_numbers<[1], [1], [0], [0], [0, 0, 1, 0], [], []>} : vector<2x240xf32>, vector<1x240xf32>, vector<2x1xf32> -> vector<2x1xf32>
    %cst_3 = arith.constant 0.000000e+00 : f32
    %3 = vector.broadcast %cst_3 : f32 to vector<2x1xf32>
    %4 = arith.subf %3, %2 : vector<2x1xf32>
    %cst_4 = arith.constant 0.000000e+00 : f32
    %5 = vector.broadcast %cst_4 : f32 to vector<2x1xf32>
    %6 = arith.maximumf %4, %5 : vector<2x1xf32>
    %7 = math.absf %2 : vector<2x1xf32>
    %cst_5 = arith.constant 0.000000e+00 : f32
    %8 = vector.broadcast %cst_5 : f32 to vector<2x1xf32>
    %9 = arith.subf %8, %7 : vector<2x1xf32>
    %10 = math.exp %9 : vector<2x1xf32>
    %11 = math.log1p %10 : vector<2x1xf32>
    %12 = arith.addf %6, %11 : vector<2x1xf32>
    %cst_6 = arith.constant 0.000000e+00 : f32
    %13 = vector.broadcast %cst_6 : f32 to vector<2x1xf32>
    %14 = arith.subf %13, %12 : vector<2x1xf32>
    %15 = arith.subf %14, %2 : vector<2x1xf32>
    %16 = tpu.concatenate %14, %15 in 1 : vector<2x1xf32>, vector<2x1xf32> -> vector<2x2xf32>
    %c0_7 = arith.constant 0 : index
    %c0_8 = arith.constant 0 : index
    %17 = vector.load %arg3[%c0_7, %c0_8] : memref<2x2xf32, #tpu.memory_space<vmem>>, vector<2x2xf32>
    tpu.vector_store %arg3[%c0_7, %c0_8], %16 {strides = array<i32>} : memref<2x2xf32, #tpu.memory_space<vmem>>, vector<2x2xf32>,
    return
  }
  func.func @transform_0(%arg0: i32) -> (i32, i32) {
    %c0_i32 = arith.constant 0 : i32
    %c0_i32_0 = arith.constant 0 : i32
    return %arg0, %c0_i32 : i32, i32
  }
  func.func @transform_1(%arg0: i32) -> (i32, i32) {
    %c0_i32 = arith.constant 0 : i32
    %c0_i32_0 = arith.constant 0 : i32
    %c0_i32_1 = arith.constant 0 : i32
    return %c0_i32, %c0_i32_0 : i32, i32
  }
  func.func @transform_2(%arg0: i32) -> (i32, i32) {
    %c0_i32 = arith.constant 0 : i32
    %c0_i32_0 = arith.constant 0 : i32
    return %arg0, %c0_i32 : i32, i32
  }
}

</mosaic_0001>

<bundles_post_ra>
// kernel: tpu_custom_call.1
= control target key start
LH: loop header
LB: loop body
LE: loop exit
PB: predicated region body
PF: predicated region fallthrough
CT: control target
= control target key end

     0   :  { %7 = vsyncpa [#allocation3], 0  ;;  %s214_s0 = inlined_call_operand.hbm [shape: f32[2,240], index: 0, kind: input, shape index: {}]   ;;  %s215_s1 = inlined_call_operand.hbm [shape: f32[1,240], index: 1, kind: input, shape index: {}]   ;;  %s216_s2 = inlined_call_operand.hbm [shape: f32[2,2], index: 2, kind: output, shape index: {}]  }
   0x1   :  { %8 = vsyncpa [#allocation6], 0 }
   0x2   :  { %9 = vsyncpa [#allocation4], 0  ;;  %s15_s11 = sshll.u32 %s214_s0, 4  ;;  %s187_s12 = smov [#allocation2]   ;;  %s16_s11 = int_to_ptr.hbm [resolvable:$true] %s15_s11 }
   0x3   :  { %s17_s13 = sshll.u32 %s187_s12, 4  ;;  %s26_s16 = sshll.u32 %s215_s1, 4  ;;  %s18_s13 = int_to_ptr.vmem [resolvable:$true] %s17_s13  ;;  %s27_s16 = int_to_ptr.hbm [resolvable:$true] %s26_s16 }
   0x4   :  { %20 = dma.hbm_to_vmem [thread:$0]  %s16_s11, 64, %s18_s13, [#allocation3]  }
   0x5   :  { %s188_s17 = smov [#allocation5]  }
   0x6   :  { %s28_s18 = sshll.u32 %s188_s17, 4  ;;  %s29_s18 = int_to_ptr.vmem [resolvable:$true] %s28_s18 }
   0x7   :  { %31 = dma.hbm_to_vmem [thread:$0]  %s27_s16, 32, %s29_s18, [#allocation6]  }
   0x8   :  { %181 = dma.done.wait [#allocation3], 64  }
   0x9   :  { %182 = vsyncadd [#allocation3], 4294967232 }
   0xa   :  { %183 = dma.done.wait [#allocation6], 32  }
   0xb   :  { %184 = vsyncadd [#allocation6], 4294967264  ;;  %v41_v0 = vld [vmem:[#allocation5] sm:$0x3]  ;;  %vm46_vm0 = vcmask 1041408   ;;  %vm57_vm1 = vcmask 910336  }
   0xc   :  { %v43_v1 = vperm.slane %v41_v0, 0  ;;  %v44_v2 = vperm.slane %v41_v0, 1  ;;  %v40_v3 = vld [vmem:[#allocation2] sm:$0xf]  ;;  %s189_s0 = smov [#allocation7]   ;;  %s91_s21 = sshll.u32 %s216_s2, 4  ;;  %s92_s21 = int_to_ptr.hbm [resolvable:$true] %s91_s21 }
   0xd   :  { %s89_s1 = sshll.u32 %s189_s0, 4  ;;  %vm80_vm3 = vcmask 7168   ;;  %vm82_vm4 = vcmask 9216   ;;  %s90_s1 = int_to_ptr.vmem [resolvable:$true] %s89_s1 }
   0xe   :  { %v45_v4 = vrot.slane %v44_v2, 6 }
  0x10   :  { %v47_v5 = vsel %vm46_vm0, %v43_v1, %v45_v4 }
  0x11   :  { %v49_v6 = vmul.f32 %v47_v5, %v40_v3 }
  0x13   :  { %51 = vst [vmem:[#allocation1] ss:$4 sm:$0xff] %v49_v6 }
  0x1a   :  { %v52_v7 = vld.sshfl [vmem:[#allocation1] sm:$0xff pattern:$0x73625140]  ;;  %v53_v8 = vld.sshfl [vmem:[#allocation1 + $0x8] sm:$0xff pattern:$0x73625140] }
  0x1b   :  { %v56_v9 = vsel %vm46_vm0, %v52_v7, 0.0  ;;  %v58_v10 = vsel %vm57_vm1, %v53_v8, 0.0 }
  0x1c   :  { %v59_v11 = vadd.f32 %v58_v10, %v56_v9 }
  0x1e   :  { %60 = vadd.xlane.f32.xlu0 %v59_v11 }
  0x91   :  { %v61_v12 = vpop.xlane.xlu0 %60 }
  0x92   :  { %v64_v13 = vand.u32 2147483647, %v61_v12  ;;  %v62_v20 = vsub.f32 0.0, %v61_v12 }
  0x94   :  { %v65_v14 = vsub.f32 0.0, %v64_v13  ;;  %v63_v25 = vmax.f32 %v62_v20, 0.0 }
  0x96   :  { %v66_v15 = vmul.f32 1.442695, %v65_v14 }
  0x98   :  { %105 = vpow2.f32 %v66_v15 }
  0x9e   :  { %v106_v16 = vpop.eup %105 }
  0x9f   :  { %v68_v17 = vadd.f32 1.0, %v106_v16  ;;  %v71_v18 = vmul.f32 -0.5, %v106_v16  ;;  %v74_v21 = vand.u32 2147483647, %v106_v16 }
  0xa1   :  { %107 = vlog2.f32 %v68_v17  ;;  %v72_v19 = vadd.f32 1.0, %v71_v18  ;;  %vm75_vm2 = vcmp.lt.f32.partialorder %v74_v21, 0.0004427343 }
  0xa3   :  { %v73_v24 = vmul.f32 %v106_v16, %v72_v19 }
  0xa7   :  { %v108_v22 = vpop.eup %107 }
  0xa8   :  { %v70_v23 = vmul.f32 0.6931472, %v108_v22 }
  0xaa   :  { %v76_v26 = vsel %vm75_vm2, %v73_v24, %v70_v23 }
  0xab   :  { %v77_v27 = vadd.f32 %v76_v26, %v63_v25 }
  0xad   :  { %v78_v28 = vsub.f32 0.0, %v77_v27 }
  0xaf   :  { %v79_v29 = vsub.f32 %v78_v28, %v61_v12 }
  0xb1   :  { %v81_v30 = vsel %vm80_vm3, %v78_v28, %v79_v29 }
  0xb2   :  { %83 = vst.msk [vmem:[#allocation7] sm:$0x3] %vm82_vm4, %v81_v30 }
  0xb3   :  { %94 = dma.vmem_to_hbm [thread:$0]  %s90_s1, 32, %s92_s21, [#allocation4]  }
  0xb4   :  { %185 = dma.done.wait [#allocation4], 32  }
  0xb5   :  { %186 = vsyncadd [#allocation4], 4294967264 }
  0xb6   :  { %99 = vsyncpa [#allocation3], 1 }
  0xb7   :  { %100 = vsyncpa [#allocation6], 1 }
  0xb8   :  { %101 = vsyncpa [#allocation4], 1 }

</bundles_post_ra>
